<compile_context>
chip_gen: v6e
topology: v6e:2x2x1
jax: 0.10.0
libtpu: 0.0.40
codegen_flags: <defaults>
</compile_context>

<pallas_src>
import functools

import jax
import jax.numpy as jnp
from jax.experimental import pallas as pl
from jax.experimental.pallas import tpu as pltpu

_LANE_CHOICES = (1024, 512, 256, 128)     # widest lane-dense layout that divides the size
_TARGET_BLOCK_ELEMS = 256 * 1024          # ~1 MiB of f32 per block buffer


def _srl32(x, s):
    """Logical right shift for int32 (arithmetic shift + mask)."""
    mask = (1 << (32 - s)) - 1
    return (x >> s) & mask


def _erfinv_f32(x):
    """Single-precision inverse error function (Giles 2010 approximation)."""
    w = -jnp.log((1.0 - x) * (1.0 + x))
    # central branch (w < 5)
    w_s = w - 2.5
    p_s = 2.81022636e-08
    p_s = 3.43273939e-07 + p_s * w_s
    p_s = -3.5233877e-06 + p_s * w_s
    p_s = -4.39150654e-06 + p_s * w_s
    p_s = 0.00021858087 + p_s * w_s
    p_s = -0.00125372503 + p_s * w_s
    p_s = -0.00417768164 + p_s * w_s
    p_s = 0.246640727 + p_s * w_s
    p_s = 1.50140941 + p_s * w_s
    # tail branch (w >= 5)
    w_l = jnp.sqrt(w) - 3.0
    p_l = -0.000200214257
    p_l = 0.000100950558 + p_l * w_l
    p_l = 0.00134934322 + p_l * w_l
    p_l = -0.00367342844 + p_l * w_l
    p_l = 0.00573950773 + p_l * w_l
    p_l = -0.0076224613 + p_l * w_l
    p_l = 0.00943887047 + p_l * w_l
    p_l = 1.00167406 + p_l * w_l
    p_l = 2.83297682 + p_l * w_l
    return jnp.where(w < 5.0, p_s, p_l) * x


def _add_noise_kernel(seed_ref, x_ref, o_ref, *, mean, std):
    blk_rows, blk_cols = x_ref.shape
    row_base = pl.program_id(0) * blk_rows

    # Global element index: unique per element, independent of the tiling.
    rows = jax.lax.broadcasted_iota(jnp.int32, (blk_rows, blk_cols), 0)
    cols = jax.lax.broadcasted_iota(jnp.int32, (blk_rows, blk_cols), 1)
    idx = (row_base + rows) * blk_cols + cols

    # Stateless counter PRNG: murmur3 fmix32 keyed by the seed.
    h = idx ^ seed_ref[0]
    h = h ^ _srl32(h, 16)
    h = h * (-2048144789)          # 0x85ebca6b (as signed int32)
    h = h ^ _srl32(h, 13)
    h = h * (-1028477379)          # 0xc2b2ae35 (as signed int32)
    h = h ^ _srl32(h, 16)

    # Top 24 bits -> uniform strictly inside (0, 1).
    u = (_srl32(h, 8).astype(jnp.float32) + 0.5) * (1.0 / 16777216.0)
    # Standard normal via the inverse normal CDF: z = sqrt(2) * erfinv(2u - 1).
    z = 1.4142135623730951 * _erfinv_f32(2.0 * u - 1.0)

    noise = (z * std + mean).astype(x_ref.dtype)
    o_ref[...] = x_ref[...] + noise


@functools.partial(jax.jit, static_argnames=("mean", "std"))
def _add_noise_jit(x, seed, *, mean, std):
    orig_shape = x.shape
    n = x.size

    # Widest lane count (multiple of 128) that divides the element count;
    # only pad (rarely) when the size is not even a multiple of 128.
    n_cols = None
    for c in _LANE_CHOICES:
        if n % c == 0:
            n_cols = c
            break
    x_flat = x.reshape(-1)
    if n_cols is None:
        n_cols = 128
        pad = (-n) % n_cols
        x_flat = jnp.pad(x_flat, (0, pad))
    n_rows = x_flat.size // n_cols
    x2d = x_flat.reshape(n_rows, n_cols)

    # ~1 MiB-of-f32 row blocks, multiple of 8 sublanes (or the full row count
    # for small slabs).  Keeps VMEM bounded on v7x and enables pipelining.
    target_rows = max(8, (_TARGET_BLOCK_ELEMS // n_cols) // 8 * 8)
    block_rows = n_rows if n_rows <= target_rows else target_rows
    grid = (pl.cdiv(n_rows, block_rows),)

    seed_arr = jnp.asarray(seed, dtype=jnp.int32).reshape(1)
    kernel = functools.partial(_add_noise_kernel, mean=float(mean), std=float(std))

    out2d = pl.pallas_call(
        kernel,
        out_shape=jax.ShapeDtypeStruct((n_rows, n_cols), x.dtype),
        grid=grid,
        in_specs=[
            pl.BlockSpec(memory_space=pltpu.SMEM),                 # seed scalar
            pl.BlockSpec((block_rows, n_cols), lambda i: (i, 0)),  # input tile
        ],
        out_specs=pl.BlockSpec((block_rows, n_cols), lambda i: (i, 0)),
        compiler_params=pltpu.CompilerParams(
            dimension_semantics=("parallel",),
        ),
    )(seed_arr, x2d)

    out_flat = out2d.reshape(-1)
    if out_flat.size != n:
        out_flat = out_flat[:n]
    return out_flat.reshape(orig_shape)


def add_noise(x, *, mean=0.0, std=0.1, seed=0):
    """out = x + N(mean, std) noise of the same shape, computed in Pallas.

    Deterministic per seed; vary `seed` across calls to mimic torch's fresh
    draws.
    """
    return _add_noise_jit(x, seed, mean=float(mean), std=float(std))


if __name__ == "__main__":
    key = jax.random.PRNGKey(0)
    # NCHW input: batch=2, channels=4, spatial=16x16
    x = jax.random.normal(key, (2, 4, 16, 16), dtype=jnp.float32)

    mean, std = 0.0, 0.1
    out = add_noise(x, mean=mean, std=std, seed=1234)
    out = jax.block_until_ready(out)

    # Sanity checks: shape/dtype preserved; residual noise has roughly the
    # requested statistics (loose tolerances — it's random).
    assert out.shape == x.shape and out.dtype == x.dtype
    noise = out - x
    noise_mean = float(jnp.mean(noise))
    noise_std = float(jnp.std(noise))
    assert abs(noise_mean - mean) < 0.02, noise_mean
    assert abs(noise_std - std) < 0.03, noise_std

    print("KERNEL_OK")
</pallas_src>

<mosaic_0001>
module attributes {stable_mosaic.version = 11 : i64} {
  func.func @_add_noise_kernel(%arg0: i32, %arg1: memref<1xi32, #tpu.memory_space<smem>>, %arg2: memref<2x1024xf32, #tpu.memory_space<vmem>>, %arg3: memref<2x1024xf32, #tpu.memory_space<vmem>>) attributes {dimension_semantics = [#tpu.dimension_semantics<parallel>], iteration_bounds = array<i64: 1>, scalar_prefetch = 0 : i64, scratch_operands = 0 : i64, tpu.core_type = #tpu.core_type<tc>, window_params = [{transform_indices = @transform_0, window_bounds = array<i64: 1>}, {transform_indices = @transform_1, window_bounds = array<i64: 2, 1024>}, {transform_indices = @transform_2, window_bounds = array<i64: 2, 1024>}]} {
    %c2_i32 = arith.constant 2 : i32
    %0 = arith.muli %arg0, %c2_i32 : i32
    %1 = tpu.iota {dimensions = array<i32: 0>} : vector<2x1024xi32>
    %2 = tpu.iota {dimensions = array<i32: 1>} : vector<2x1024xi32>
    %3 = vector.broadcast %0 : i32 to vector<2x1024xi32>
    %4 = arith.addi %3, %1 : vector<2x1024xi32>
    %c1024_i32 = arith.constant 1024 : i32
    %5 = vector.broadcast %c1024_i32 : i32 to vector<2x1024xi32>
    %6 = arith.muli %4, %5 : vector<2x1024xi32>
    %7 = arith.addi %6, %2 : vector<2x1024xi32>
    %c0 = arith.constant 0 : index
    %8 = memref.load %arg1[%c0] : memref<1xi32, #tpu.memory_space<smem>>
    %9 = vector.broadcast %8 : i32 to vector<2x1024xi32>
    %10 = arith.xori %7, %9 : vector<2x1024xi32>
    %c16_i32 = arith.constant 16 : i32
    %11 = vector.broadcast %c16_i32 : i32 to vector<2x1024xi32>
    %12 = arith.shrsi %10, %11 : vector<2x1024xi32>
    %c65535_i32 = arith.constant 65535 : i32
    %13 = vector.broadcast %c65535_i32 : i32 to vector<2x1024xi32>
    %14 = arith.andi %12, %13 : vector<2x1024xi32>
    %15 = arith.xori %10, %14 : vector<2x1024xi32>
    %c-2048144789_i32 = arith.constant -2048144789 : i32
    %16 = vector.broadcast %c-2048144789_i32 : i32 to vector<2x1024xi32>
    %17 = arith.muli %15, %16 : vector<2x1024xi32>
    %c13_i32 = arith.constant 13 : i32
    %18 = vector.broadcast %c13_i32 : i32 to vector<2x1024xi32>
    %19 = arith.shrsi %17, %18 : vector<2x1024xi32>
    %c524287_i32 = arith.constant 524287 : i32
    %20 = vector.broadcast %c524287_i32 : i32 to vector<2x1024xi32>
    %21 = arith.andi %19, %20 : vector<2x1024xi32>
    %22 = arith.xori %17, %21 : vector<2x1024xi32>
    %c-1028477379_i32 = arith.constant -1028477379 : i32
    %23 = vector.broadcast %c-1028477379_i32 : i32 to vector<2x1024xi32>
    %24 = arith.muli %22, %23 : vector<2x1024xi32>
    %c16_i32_0 = arith.constant 16 : i32
    %25 = vector.broadcast %c16_i32_0 : i32 to vector<2x1024xi32>
    %26 = arith.shrsi %24, %25 : vector<2x1024xi32>
    %c65535_i32_1 = arith.constant 65535 : i32
    %27 = vector.broadcast %c65535_i32_1 : i32 to vector<2x1024xi32>
    %28 = arith.andi %26, %27 : vector<2x1024xi32>
    %29 = arith.xori %24, %28 : vector<2x1024xi32>
    %c8_i32 = arith.constant 8 : i32
    %30 = vector.broadcast %c8_i32 : i32 to vector<2x1024xi32>
    %31 = arith.shrsi %29, %30 : vector<2x1024xi32>
    %c16777215_i32 = arith.constant 16777215 : i32
    %32 = vector.broadcast %c16777215_i32 : i32 to vector<2x1024xi32>
    %33 = arith.andi %31, %32 : vector<2x1024xi32>
    %34 = arith.sitofp %33 : vector<2x1024xi32> to vector<2x1024xf32>
    %cst = arith.constant 5.000000e-01 : f32
    %35 = vector.broadcast %cst : f32 to vector<2x1024xf32>
    %36 = arith.addf %34, %35 : vector<2x1024xf32>
    %cst_2 = arith.constant 5.96046448E-8 : f32
    %37 = vector.broadcast %cst_2 : f32 to vector<2x1024xf32>
    %38 = arith.mulf %36, %37 : vector<2x1024xf32>
    %cst_3 = arith.constant 2.000000e+00 : f32
    %39 = vector.broadcast %cst_3 : f32 to vector<2x1024xf32>
    %40 = arith.mulf %39, %38 : vector<2x1024xf32>
    %cst_4 = arith.constant 1.000000e+00 : f32
    %41 = vector.broadcast %cst_4 : f32 to vector<2x1024xf32>
    %42 = arith.subf %40, %41 : vector<2x1024xf32>
    %cst_5 = arith.constant 1.000000e+00 : f32
    %43 = vector.broadcast %cst_5 : f32 to vector<2x1024xf32>
    %44 = arith.subf %43, %42 : vector<2x1024xf32>
    %cst_6 = arith.constant 1.000000e+00 : f32
    %45 = vector.broadcast %cst_6 : f32 to vector<2x1024xf32>
    %46 = arith.addf %45, %42 : vector<2x1024xf32>
    %47 = arith.mulf %44, %46 : vector<2x1024xf32>
    %48 = math.log %47 : vector<2x1024xf32>
    %cst_7 = arith.constant 0.000000e+00 : f32
    %49 = vector.broadcast %cst_7 : f32 to vector<2x1024xf32>
    %50 = arith.subf %49, %48 : vector<2x1024xf32>
    %cst_8 = arith.constant 2.500000e+00 : f32
    %51 = vector.broadcast %cst_8 : f32 to vector<2x1024xf32>
    %52 = arith.subf %50, %51 : vector<2x1024xf32>
    %cst_9 = arith.constant 2.81022636E-8 : f32
    %53 = vector.broadcast %cst_9 : f32 to vector<2x1024xf32>
    %54 = arith.mulf %53, %52 : vector<2x1024xf32>
    %cst_10 = arith.constant 3.43273939E-7 : f32
    %55 = vector.broadcast %cst_10 : f32 to vector<2x1024xf32>
    %56 = arith.addf %55, %54 : vector<2x1024xf32>
    %57 = arith.mulf %56, %52 : vector<2x1024xf32>
    %cst_11 = arith.constant -3.5233877E-6 : f32
    %58 = vector.broadcast %cst_11 : f32 to vector<2x1024xf32>
    %59 = arith.addf %58, %57 : vector<2x1024xf32>
    %60 = arith.mulf %59, %52 : vector<2x1024xf32>
    %cst_12 = arith.constant -4.39150654E-6 : f32
    %61 = vector.broadcast %cst_12 : f32 to vector<2x1024xf32>
    %62 = arith.addf %61, %60 : vector<2x1024xf32>
    %63 = arith.mulf %62, %52 : vector<2x1024xf32>
    %cst_13 = arith.constant 2.1858087E-4 : f32
    %64 = vector.broadcast %cst_13 : f32 to vector<2x1024xf32>
    %65 = arith.addf %64, %63 : vector<2x1024xf32>
    %66 = arith.mulf %65, %52 : vector<2x1024xf32>
    %cst_14 = arith.constant -0.00125372503 : f32
    %67 = vector.broadcast %cst_14 : f32 to vector<2x1024xf32>
    %68 = arith.addf %67, %66 : vector<2x1024xf32>
    %69 = arith.mulf %68, %52 : vector<2x1024xf32>
    %cst_15 = arith.constant -0.00417768164 : f32
    %70 = vector.broadcast %cst_15 : f32 to vector<2x1024xf32>
    %71 = arith.addf %70, %69 : vector<2x1024xf32>
    %72 = arith.mulf %71, %52 : vector<2x1024xf32>
    %cst_16 = arith.constant 0.246640727 : f32
    %73 = vector.broadcast %cst_16 : f32 to vector<2x1024xf32>
    %74 = arith.addf %73, %72 : vector<2x1024xf32>
    %75 = arith.mulf %74, %52 : vector<2x1024xf32>
    %cst_17 = arith.constant 1.50140941 : f32
    %76 = vector.broadcast %cst_17 : f32 to vector<2x1024xf32>
    %77 = arith.addf %76, %75 : vector<2x1024xf32>
    %78 = math.sqrt %50 : vector<2x1024xf32>
    %cst_18 = arith.constant 3.000000e+00 : f32
    %79 = vector.broadcast %cst_18 : f32 to vector<2x1024xf32>
    %80 = arith.subf %78, %79 : vector<2x1024xf32>
    %cst_19 = arith.constant -2.00214257E-4 : f32
    %81 = vector.broadcast %cst_19 : f32 to vector<2x1024xf32>
    %82 = arith.mulf %81, %80 : vector<2x1024xf32>
    %cst_20 = arith.constant 1.00950558E-4 : f32
    %83 = vector.broadcast %cst_20 : f32 to vector<2x1024xf32>
    %84 = arith.addf %83, %82 : vector<2x1024xf32>
    %85 = arith.mulf %84, %80 : vector<2x1024xf32>
    %cst_21 = arith.constant 0.00134934322 : f32
    %86 = vector.broadcast %cst_21 : f32 to vector<2x1024xf32>
    %87 = arith.addf %86, %85 : vector<2x1024xf32>
    %88 = arith.mulf %87, %80 : vector<2x1024xf32>
    %cst_22 = arith.constant -0.00367342844 : f32
    %89 = vector.broadcast %cst_22 : f32 to vector<2x1024xf32>
    %90 = arith.addf %89, %88 : vector<2x1024xf32>
    %91 = arith.mulf %90, %80 : vector<2x1024xf32>
    %cst_23 = arith.constant 0.00573950773 : f32
    %92 = vector.broadcast %cst_23 : f32 to vector<2x1024xf32>
    %93 = arith.addf %92, %91 : vector<2x1024xf32>
    %94 = arith.mulf %93, %80 : vector<2x1024xf32>
    %cst_24 = arith.constant -0.0076224613 : f32
    %95 = vector.broadcast %cst_24 : f32 to vector<2x1024xf32>
    %96 = arith.addf %95, %94 : vector<2x1024xf32>
    %97 = arith.mulf %96, %80 : vector<2x1024xf32>
    %cst_25 = arith.constant 0.00943887047 : f32
    %98 = vector.broadcast %cst_25 : f32 to vector<2x1024xf32>
    %99 = arith.addf %98, %97 : vector<2x1024xf32>
    %100 = arith.mulf %99, %80 : vector<2x1024xf32>
    %cst_26 = arith.constant 1.00167406 : f32
    %101 = vector.broadcast %cst_26 : f32 to vector<2x1024xf32>
    %102 = arith.addf %101, %100 : vector<2x1024xf32>
    %103 = arith.mulf %102, %80 : vector<2x1024xf32>
    %cst_27 = arith.constant 2.83297682 : f32
    %104 = vector.broadcast %cst_27 : f32 to vector<2x1024xf32>
    %105 = arith.addf %104, %103 : vector<2x1024xf32>
    %cst_28 = arith.constant 5.000000e+00 : f32
    %106 = vector.broadcast %cst_28 : f32 to vector<2x1024xf32>
    %107 = arith.cmpf olt, %50, %106 : vector<2x1024xf32>
    %108 = arith.select %107, %77, %105 : vector<2x1024xi1>, vector<2x1024xf32>
    %109 = arith.mulf %108, %42 : vector<2x1024xf32>
    %cst_29 = arith.constant 1.41421354 : f32
    %110 = vector.broadcast %cst_29 : f32 to vector<2x1024xf32>
    %111 = arith.mulf %110, %109 : vector<2x1024xf32>
    %cst_30 = arith.constant 1.000000e-01 : f32
    %112 = vector.broadcast %cst_30 : f32 to vector<2x1024xf32>
    %113 = arith.mulf %111, %112 : vector<2x1024xf32>
    %cst_31 = arith.constant 0.000000e+00 : f32
    %114 = vector.broadcast %cst_31 : f32 to vector<2x1024xf32>
    %115 = arith.addf %113, %114 : vector<2x1024xf32>
    %c0_32 = arith.constant 0 : index
    %c0_33 = arith.constant 0 : index
    %116 = vector.load %arg2[%c0_32, %c0_33] : memref<2x1024xf32, #tpu.memory_space<vmem>>, vector<2x1024xf32>
    %117 = arith.addf %116, %115 : vector<2x1024xf32>
    %c0_34 = arith.constant 0 : index
    %c0_35 = arith.constant 0 : index
    %118 = vector.load %arg3[%c0_34, %c0_35] : memref<2x1024xf32, #tpu.memory_space<vmem>>, vector<2x1024xf32>
    tpu.vector_store %arg3[%c0_34, %c0_35], %117 {strides = array<i32>} : memref<2x1024xf32, #tpu.memory_space<vmem>>, vector<2x1024xf32>,
    return
  }
  func.func @transform_0(%arg0: i32) -> i32 {
    %c0_i32 = arith.constant 0 : i32
    %c0_i32_0 = arith.constant 0 : i32
    return %c0_i32 : i32
  }
  func.func @transform_1(%arg0: i32) -> (i32, i32) {
    %c0_i32 = arith.constant 0 : i32
    %c0_i32_0 = arith.constant 0 : i32
    return %arg0, %c0_i32 : i32, i32
  }
  func.func @transform_2(%arg0: i32) -> (i32, i32) {
    %c0_i32 = arith.constant 0 : i32
    %c0_i32_0 = arith.constant 0 : i32
    return %arg0, %c0_i32 : i32, i32
  }
}

</mosaic_0001>

<bundles_post_ra>
// kernel: _add_noise_jit.1
= control target key start
LH: loop header
LB: loop body
LE: loop exit
PB: predicated region body
PF: predicated region fallthrough
CT: control target
= control target key end

     0   :  { %v13_v0 = vlaneseq  ;;  %s1147_s0 = inlined_call_operand.<no memory space> [shape: s32[1], index: 0, kind: input, shape index: {}]   ;;  %s1148_s1 = inlined_call_operand.vmem [shape: f32[2,1024], index: 1, kind: input, shape index: {}]   ;;  %s1149_s2 = inlined_call_operand.vmem [shape: f32[2,1024], index: 2, kind: output, shape index: {}]  }
   0x1   :  { %v36_v11 = vstv %s1147_s0 }
   0x2   :  { %v772_v1 = vshrl.u32 %v13_v0, 7  ;;  %v16_v2 = vand.u32 127, %v13_v0 }
   0x4   :  { %v17_v3 = vadd.s32 128, %v16_v2  ;;  %v18_v4 = vadd.s32 256, %v16_v2  ;;  %v19_v5 = vadd.s32 384, %v16_v2  ;;  %v20_v6 = vadd.s32 512, %v16_v2 }
   0x5   :  { %v21_v7 = vadd.s32 640, %v16_v2  ;;  %v22_v8 = vadd.s32 768, %v16_v2  ;;  %v23_v9 = vadd.s32 896, %v16_v2  ;;  %v26_v10 = vmul.u32 1024, %v772_v1 }
   0x7   :  { %v27_v12 = vadd.s32 %v26_v10, %v16_v2  ;;  %v28_v13 = vadd.s32 %v26_v10, %v17_v3  ;;  %v29_v14 = vadd.s32 %v26_v10, %v18_v4  ;;  %v30_v15 = vadd.s32 %v26_v10, %v19_v5 }
   0x8   :  { %v31_v16 = vadd.s32 %v26_v10, %v20_v6  ;;  %v32_v17 = vadd.s32 %v26_v10, %v21_v7  ;;  %v33_v18 = vadd.s32 %v26_v10, %v22_v8  ;;  %v34_v19 = vadd.s32 %v26_v10, %v23_v9 }
   0x9   :  { %v37_v20 = vxor.u32 %v36_v11, %v27_v12  ;;  %v38_v21 = vxor.u32 %v36_v11, %v28_v13  ;;  %v39_v22 = vxor.u32 %v36_v11, %v29_v14  ;;  %v40_v23 = vxor.u32 %v36_v11, %v30_v15 }
   0xa   :  { %v41_v24 = vxor.u32 %v36_v11, %v31_v16  ;;  %v42_v25 = vxor.u32 %v36_v11, %v32_v17  ;;  %v43_v26 = vxor.u32 %v36_v11, %v33_v18  ;;  %v44_v27 = vxor.u32 %v36_v11, %v34_v19 }
   0xb   :  { %v667_v28 = vshrl.u32 %v37_v20, 16  ;;  %v668_v29 = vshrl.u32 %v38_v21, 16  ;;  %v669_v30 = vshrl.u32 %v39_v22, 16  ;;  %v670_v31 = vshrl.u32 %v40_v23, 16 }
   0xc   :  { %v671_v32 = vshrl.u32 %v41_v24, 16  ;;  %v672_v33 = vshrl.u32 %v42_v25, 16  ;;  %v673_v34 = vshrl.u32 %v43_v26, 16  ;;  %v674_v35 = vshrl.u32 %v44_v27, 16 }
   0xd   :  { %v61_v36 = vxor.u32 %v667_v28, %v37_v20  ;;  %v62_v37 = vxor.u32 %v668_v29, %v38_v21  ;;  %v63_v38 = vxor.u32 %v669_v30, %v39_v22  ;;  %v64_v39 = vxor.u32 %v670_v31, %v40_v23 }
   0xe   :  { %v65_v40 = vxor.u32 %v671_v32, %v41_v24  ;;  %v66_v41 = vxor.u32 %v672_v33, %v42_v25  ;;  %v67_v42 = vxor.u32 %v673_v34, %v43_v26  ;;  %v68_v43 = vxor.u32 %v674_v35, %v44_v27 }
   0xf   :  { %v69_v44 = vmul.u32 2246822507, %v61_v36  ;;  %v70_v45 = vmul.u32 2246822507, %v62_v37 }
  0x10   :  { %v71_v46 = vmul.u32 2246822507, %v63_v38  ;;  %v72_v47 = vmul.u32 2246822507, %v64_v39 }
  0x11   :  { %v73_v48 = vmul.u32 2246822507, %v65_v40  ;;  %v74_v49 = vmul.u32 2246822507, %v66_v41  ;;  %v675_v50 = vshrl.u32 %v69_v44, 13  ;;  %v676_v51 = vshrl.u32 %v70_v45, 13 }
  0x12   :  { %v75_v52 = vmul.u32 2246822507, %v67_v42  ;;  %v76_v53 = vmul.u32 2246822507, %v68_v43  ;;  %v677_v54 = vshrl.u32 %v71_v46, 13  ;;  %v678_v55 = vshrl.u32 %v72_v47, 13 }
  0x13   :  { %v679_v56 = vshrl.u32 %v73_v48, 13  ;;  %v680_v57 = vshrl.u32 %v74_v49, 13  ;;  %v93_v58 = vxor.u32 %v675_v50, %v69_v44  ;;  %v94_v59 = vxor.u32 %v676_v51, %v70_v45 }
  0x14   :  { %v681_v60 = vshrl.u32 %v75_v52, 13  ;;  %v682_v61 = vshrl.u32 %v76_v53, 13  ;;  %v95_v62 = vxor.u32 %v677_v54, %v71_v46  ;;  %v96_v63 = vxor.u32 %v678_v55, %v72_v47 }
  0x15   :  { %v97_v0 = vxor.u32 %v679_v56, %v73_v48  ;;  %v98_v2 = vxor.u32 %v680_v57, %v74_v49  ;;  %v101_v3 = vmul.u32 3266489917, %v93_v58  ;;  %v102_v4 = vmul.u32 3266489917, %v94_v59 }
  0x16   :  { %v99_v5 = vxor.u32 %v681_v60, %v75_v52  ;;  %v100_v6 = vxor.u32 %v682_v61, %v76_v53  ;;  %v103_v7 = vmul.u32 3266489917, %v95_v62  ;;  %v104_v8 = vmul.u32 3266489917, %v96_v63 }
  0x17   :  { %v105_v9 = vmul.u32 3266489917, %v97_v0  ;;  %v106_v10 = vmul.u32 3266489917, %v98_v2  ;;  %v683_v11 = vshrl.u32 %v101_v3, 16  ;;  %v684_v12 = vshrl.u32 %v102_v4, 16 }
  0x18   :  { %v107_v13 = vmul.u32 3266489917, %v99_v5  ;;  %v108_v14 = vmul.u32 3266489917, %v100_v6  ;;  %v685_v15 = vshrl.u32 %v103_v7, 16  ;;  %v686_v16 = vshrl.u32 %v104_v8, 16 }
  0x19   :  { %v687_v17 = vshrl.u32 %v105_v9, 16  ;;  %v688_v18 = vshrl.u32 %v106_v10, 16  ;;  %v125_v19 = vxor.u32 %v683_v11, %v101_v3  ;;  %v126_v20 = vxor.u32 %v684_v12, %v102_v4 }
  0x1a   :  { %v689_v21 = vshrl.u32 %v107_v13, 16  ;;  %v690_v22 = vshrl.u32 %v108_v14, 16  ;;  %v127_v23 = vxor.u32 %v685_v15, %v103_v7  ;;  %v128_v24 = vxor.u32 %v686_v16, %v104_v8 }
  0x1b   :  { %v129_v25 = vxor.u32 %v687_v17, %v105_v9  ;;  %v130_v26 = vxor.u32 %v688_v18, %v106_v10  ;;  %v691_v27 = vshrl.u32 %v125_v19, 8  ;;  %v692_v28 = vshrl.u32 %v126_v20, 8 }
  0x1c   :  { %v131_v29 = vxor.u32 %v689_v21, %v107_v13  ;;  %v132_v30 = vxor.u32 %v690_v22, %v108_v14  ;;  %v693_v31 = vshrl.u32 %v127_v23, 8  ;;  %v694_v32 = vshrl.u32 %v128_v24, 8 }
  0x1d   :  { %v695_v33 = vshrl.u32 %v129_v25, 8  ;;  %v696_v34 = vshrl.u32 %v130_v26, 8  ;;  %v149_v35 = vcvt.s32.f32 %v691_v27  ;;  %v150_v36 = vcvt.s32.f32 %v692_v28 }
  0x1e   :  { %v697_v37 = vshrl.u32 %v131_v29, 8  ;;  %v698_v38 = vshrl.u32 %v132_v30, 8  ;;  %v151_v39 = vcvt.s32.f32 %v693_v31  ;;  %v152_v40 = vcvt.s32.f32 %v694_v32 }
  0x1f   :  { %v153_v41 = vcvt.s32.f32 %v695_v33  ;;  %v154_v42 = vcvt.s32.f32 %v696_v34  ;;  %v157_v43 = vadd.f32 0.5, %v149_v35  ;;  %v158_v44 = vadd.f32 0.5, %v150_v36 }
  0x20   :  { %v155_v45 = vcvt.s32.f32 %v697_v37  ;;  %v156_v46 = vcvt.s32.f32 %v698_v38  ;;  %v159_v47 = vadd.f32 0.5, %v151_v39  ;;  %v160_v48 = vadd.f32 0.5, %v152_v40 }
  0x21   :  { %v161_v49 = vadd.f32 0.5, %v153_v41  ;;  %v162_v50 = vadd.f32 0.5, %v154_v42  ;;  %v165_v51 = vmul.f32 5.9604645e-08, %v157_v43  ;;  %v166_v52 = vmul.f32 5.9604645e-08, %v158_v44 }
  0x22   :  { %v163_v53 = vadd.f32 0.5, %v155_v45  ;;  %v164_v54 = vadd.f32 0.5, %v156_v46  ;;  %v167_v55 = vmul.f32 5.9604645e-08, %v159_v47  ;;  %v168_v56 = vmul.f32 5.9604645e-08, %v160_v48 }
  0x23   :  { %v169_v57 = vmul.f32 5.9604645e-08, %v161_v49  ;;  %v170_v58 = vmul.f32 5.9604645e-08, %v162_v50  ;;  %v173_v59 = vmul.f32 2.0, %v165_v51  ;;  %v174_v60 = vmul.f32 2.0, %v166_v52 }
  0x24   :  { %v171_v61 = vmul.f32 5.9604645e-08, %v163_v53  ;;  %v172_v62 = vmul.f32 5.9604645e-08, %v164_v54  ;;  %v175_v63 = vmul.f32 2.0, %v167_v55  ;;  %v176_v0 = vmul.f32 2.0, %v168_v56 }
  0x25   :  { %v177_v2 = vmul.f32 2.0, %v169_v57  ;;  %v178_v3 = vmul.f32 2.0, %v170_v58  ;;  %v778_v4 = vadd.f32 -1.0, %v173_v59  ;;  %v780_v5 = vadd.f32 -1.0, %v174_v60 }
  0x26   :  { %v179_v6 = vmul.f32 2.0, %v171_v61  ;;  %v180_v7 = vmul.f32 2.0, %v172_v62  ;;  %v782_v8 = vadd.f32 -1.0, %v175_v63  ;;  %v784_v9 = vadd.f32 -1.0, %v176_v0 }
  0x27   :  { %v786_v10 = vadd.f32 -1.0, %v177_v2  ;;  %v788_v11 = vadd.f32 -1.0, %v178_v3  ;;  %v189_v13 = vsub.f32 1.0, %v778_v4  ;;  %v190_v14 = vsub.f32 1.0, %v780_v5 }
  0x28   :  { %v790_v12 = vadd.f32 -1.0, %v179_v6  ;;  %v191_v15 = vsub.f32 1.0, %v782_v8  ;;  %v795_v16 = vadd.f32 -1.0, %v180_v7  ;;  %v192_v17 = vsub.f32 1.0, %v784_v9 }
  0x29   :  { %v197_v18 = vadd.f32 1.0, %v778_v4  ;;  %v198_v19 = vadd.f32 1.0, %v780_v5  ;;  %v193_v20 = vsub.f32 1.0, %v786_v10  ;;  %v199_v21 = vadd.f32 1.0, %v782_v8 }
  0x2a   :  { %v200_v22 = vadd.f32 1.0, %v784_v9  ;;  %v194_v23 = vsub.f32 1.0, %v788_v11  ;;  %v195_v24 = vsub.f32 1.0, %v790_v12  ;;  %v201_v25 = vadd.f32 1.0, %v786_v10 }
  0x2b   :  { %v202_v26 = vadd.f32 1.0, %v788_v11  ;;  %v203_v27 = vadd.f32 1.0, %v790_v12  ;;  %v205_v28 = vmul.f32 %v197_v18, %v189_v13  ;;  %v206_v29 = vmul.f32 %v198_v19, %v190_v14 }
  0x2c   :  { %v207_v30 = vmul.f32 %v199_v21, %v191_v15  ;;  %v196_v31 = vsub.f32 1.0, %v795_v16  ;;  %v204_v32 = vadd.f32 1.0, %v795_v16  ;;  %v208_v33 = vmul.f32 %v200_v22, %v192_v17 }
  0x2d   :  { %v209_v34 = vmul.f32 %v201_v25, %v193_v20  ;;  %724 = vlog2.f32 %v205_v28  ;;  %v210_v35 = vmul.f32 %v202_v26, %v194_v23  ;;  %v211_v36 = vmul.f32 %v203_v27, %v195_v24 }
  0x2e   :  { %726 = vlog2.f32 %v206_v29  ;;  %v212_v37 = vmul.f32 %v204_v32, %v196_v31 }
  0x2f   :  { %728 = vlog2.f32 %v207_v30 }
  0x30   :  { %730 = vlog2.f32 %v208_v33 }
  0x31   :  { %732 = vlog2.f32 %v209_v34 }
  0x32   :  { %734 = vlog2.f32 %v210_v35 }
  0x33   :  { %736 = vlog2.f32 %v211_v36 }
  0x34   :  { %738 = vlog2.f32 %v212_v37 }
  0x3a   :  { %v725_v38 = vpop.eup %724 }
  0x3b   :  { %v727_v39 = vpop.eup %726  ;;  %v214_v40 = vmul.f32 0.6931472, %v725_v38 }
  0x3c   :  { %v729_v41 = vpop.eup %728  ;;  %v216_v42 = vmul.f32 0.6931472, %v727_v39 }
  0x3d   :  { %v731_v43 = vpop.eup %730  ;;  %v218_v44 = vmul.f32 0.6931472, %v729_v41  ;;  %v810_v45 = vsub.f32 0.0, %v214_v40 }
  0x3e   :  { %v733_v46 = vpop.eup %732  ;;  %v220_v47 = vmul.f32 0.6931472, %v731_v43  ;;  %v812_v48 = vsub.f32 0.0, %v216_v42 }
  0x3f   :  { %v735_v49 = vpop.eup %734  ;;  %v222_v50 = vmul.f32 0.6931472, %v733_v46  ;;  %v814_v51 = vsub.f32 0.0, %v218_v44  ;;  %v817_v52 = vadd.f32 -2.5, %v810_v45  ;;  %740 = vrsqrt.f32 %v810_v45 }
  0x40   :  { %v737_v53 = vpop.eup %736  ;;  %v224_v54 = vmul.f32 0.6931472, %v735_v49  ;;  %v819_v55 = vsub.f32 0.0, %v220_v47  ;;  %v822_v56 = vadd.f32 -2.5, %v812_v48  ;;  %vm375_vm0 = vcmp.eq.f32.partialorder %v810_v45, inf }
  0x41   :  { %v739_v57 = vpop.eup %738  ;;  %v226_v58 = vmul.f32 0.6931472, %v737_v53  ;;  %v825_v59 = vsub.f32 0.0, %v222_v50  ;;  %v828_v60 = vadd.f32 -2.5, %v814_v51  ;;  %v245_v61 = vmul.f32 2.8102264e-08, %v817_v52 }
  0x42   :  { %v228_v62 = vmul.f32 0.6931472, %v739_v57  ;;  %v831_v63 = vsub.f32 0.0, %v224_v54  ;;  %v834_v0 = vadd.f32 -2.5, %v819_v55  ;;  %v246_v2 = vmul.f32 2.8102264e-08, %v822_v56 }
  0x43   :  { %v837_v3 = vsub.f32 0.0, %v226_v58  ;;  %v840_v6 = vadd.f32 -2.5, %v825_v59  ;;  %v247_v7 = vmul.f32 2.8102264e-08, %v828_v60  ;;  %v253_v13 = vadd.f32 3.4327394e-07, %v245_v61 }
  0x44   :  { %v843_v14 = vsub.f32 0.0, %v228_v62  ;;  %v846_v15 = vadd.f32 -2.5, %v831_v63  ;;  %v248_v17 = vmul.f32 2.8102264e-08, %v834_v0  ;;  %v254_v18 = vadd.f32 3.4327394e-07, %v246_v2 }
  0x45   :  { %v850_v19 = vadd.f32 -2.5, %v837_v3  ;;  %v249_v20 = vmul.f32 2.8102264e-08, %v840_v6  ;;  %v255_v21 = vadd.f32 3.4327394e-07, %v247_v7  ;;  %v261_v22 = vmul.f32 %v817_v52, %v253_v13 }
  0x46   :  { %v855_v23 = vadd.f32 -2.5, %v843_v14  ;;  %v250_v24 = vmul.f32 2.8102264e-08, %v846_v15  ;;  %v256_v25 = vadd.f32 3.4327394e-07, %v248_v17  ;;  %v262_v26 = vmul.f32 %v822_v56, %v254_v18 }
  0x47   :  { %v251_v27 = vmul.f32 2.8102264e-08, %v850_v19  ;;  %v257_v28 = vadd.f32 3.4327394e-07, %v249_v20  ;;  %v263_v29 = vmul.f32 %v828_v60, %v255_v21  ;;  %v269_v30 = vadd.f32 -3.5233877e-06, %v261_v22 }
  0x48   :  { %v252_v31 = vmul.f32 2.8102264e-08, %v855_v23  ;;  %v258_v32 = vadd.f32 3.4327394e-07, %v250_v24  ;;  %v264_v33 = vmul.f32 %v834_v0, %v256_v25  ;;  %v270_v34 = vadd.f32 -3.5233877e-06, %v262_v26 }
  0x49   :  { %v259_v35 = vadd.f32 3.4327394e-07, %v251_v27  ;;  %v265_v36 = vmul.f32 %v840_v6, %v257_v28  ;;  %v271_v37 = vadd.f32 -3.5233877e-06, %v263_v29  ;;  %v277_v38 = vmul.f32 %v817_v52, %v269_v30 }
  0x4a   :  { %v260_v39 = vadd.f32 3.4327394e-07, %v252_v31  ;;  %v266_v40 = vmul.f32 %v846_v15, %v258_v32  ;;  %v272_v41 = vadd.f32 -3.5233877e-06, %v264_v33  ;;  %v278_v42 = vmul.f32 %v822_v56, %v270_v34 }
  0x4b   :  { %v267_v43 = vmul.f32 %v850_v19, %v259_v35  ;;  %v273_v44 = vadd.f32 -3.5233877e-06, %v265_v36  ;;  %v279_v46 = vmul.f32 %v828_v60, %v271_v37  ;;  %v285_v47 = vadd.f32 -4.3915065e-06, %v277_v38 }
  0x4c   :  { %v268_v49 = vmul.f32 %v855_v23, %v260_v39  ;;  %v274_v50 = vadd.f32 -3.5233877e-06, %v266_v40  ;;  %v280_v53 = vmul.f32 %v834_v0, %v272_v41  ;;  %v286_v54 = vadd.f32 -4.3915065e-06, %v278_v42  ;;  %v871_v57 = vpop.eup %740 }
  0x4d   :  { %v275_v58 = vadd.f32 -3.5233877e-06, %v267_v43  ;;  %v281_v61 = vmul.f32 %v840_v6, %v273_v44  ;;  %v287_v62 = vadd.f32 -4.3915065e-06, %v279_v46  ;;  %v293_v2 = vmul.f32 %v817_v52, %v285_v47 }
  0x4e   :  { %v276_v7 = vadd.f32 -3.5233877e-06, %v268_v49  ;;  %v282_v13 = vmul.f32 %v846_v15, %v274_v50  ;;  %v288_v17 = vadd.f32 -4.3915065e-06, %v280_v53  ;;  %v294_v18 = vmul.f32 %v822_v56, %v286_v54 }
  0x4f   :  { %v283_v20 = vmul.f32 %v850_v19, %v275_v58  ;;  %v289_v21 = vadd.f32 -4.3915065e-06, %v281_v61  ;;  %v295_v22 = vmul.f32 %v828_v60, %v287_v62  ;;  %v301_v24 = vadd.f32 0.00021858087, %v293_v2 }
  0x50   :  { %v284_v25 = vmul.f32 %v855_v23, %v276_v7  ;;  %v290_v26 = vadd.f32 -4.3915065e-06, %v282_v13  ;;  %v296_v27 = vmul.f32 %v834_v0, %v288_v17  ;;  %v302_v28 = vadd.f32 0.00021858087, %v294_v18 }
  0x51   :  { %v291_v29 = vadd.f32 -4.3915065e-06, %v283_v20  ;;  %v297_v30 = vmul.f32 %v840_v6, %v289_v21  ;;  %v303_v31 = vadd.f32 0.00021858087, %v295_v22  ;;  %v309_v32 = vmul.f32 %v817_v52, %v301_v24 }
  0x52   :  { %v292_v33 = vadd.f32 -4.3915065e-06, %v284_v25  ;;  %v298_v34 = vmul.f32 %v846_v15, %v290_v26  ;;  %v304_v35 = vadd.f32 0.00021858087, %v296_v27  ;;  %v310_v36 = vmul.f32 %v822_v56, %v302_v28 }
  0x53   :  { %v299_v37 = vmul.f32 %v850_v19, %v291_v29  ;;  %v305_v38 = vadd.f32 0.00021858087, %v297_v30  ;;  %v311_v39 = vmul.f32 %v828_v60, %v303_v31  ;;  %v317_v40 = vadd.f32 -0.001253725, %v309_v32 }
  0x54   :  { %v300_v41 = vmul.f32 %v855_v23, %v292_v33  ;;  %v306_v42 = vadd.f32 0.00021858087, %v298_v34  ;;  %v312_v43 = vmul.f32 %v834_v0, %v304_v35  ;;  %v318_v44 = vadd.f32 -0.001253725, %v310_v36 }
  0x55   :  { %v307_v46 = vadd.f32 0.00021858087, %v299_v37  ;;  %v313_v47 = vmul.f32 %v840_v6, %v305_v38  ;;  %v319_v49 = vadd.f32 -0.001253725, %v311_v39  ;;  %v325_v62 = vmul.f32 %v817_v52, %v317_v40 }
  0x56   :  { %v308_v50 = vadd.f32 0.00021858087, %v300_v41  ;;  %v314_v53 = vmul.f32 %v846_v15, %v306_v42  ;;  %v320_v54 = vadd.f32 -0.001253725, %v312_v43  ;;  %v326_v2 = vmul.f32 %v822_v56, %v318_v44 }
  0x57   :  { %v315_v58 = vmul.f32 %v850_v19, %v307_v46  ;;  %v321_v61 = vadd.f32 -0.001253725, %v313_v47  ;;  %v327_v17 = vmul.f32 %v828_v60, %v319_v49  ;;  %v333_v26 = vadd.f32 -0.0041776816, %v325_v62 }
  0x58   :  { %v316_v7 = vmul.f32 %v855_v23, %v308_v50  ;;  %v322_v13 = vadd.f32 -0.001253725, %v314_v53  ;;  %v328_v18 = vmul.f32 %v834_v0, %v320_v54  ;;  %v334_v28 = vadd.f32 -0.0041776816, %v326_v2 }
  0x59   :  { %v323_v20 = vadd.f32 -0.001253725, %v315_v58  ;;  %v329_v21 = vmul.f32 %v840_v6, %v321_v61  ;;  %v335_v29 = vadd.f32 -0.0041776816, %v327_v17  ;;  %v341_v35 = vmul.f32 %v817_v52, %v333_v26 }
  0x5a   :  { %v324_v22 = vadd.f32 -0.001253725, %v316_v7  ;;  %v330_v24 = vmul.f32 %v846_v15, %v322_v13  ;;  %v336_v30 = vadd.f32 -0.0041776816, %v328_v18  ;;  %v342_v36 = vmul.f32 %v822_v56, %v334_v28 }
  0x5b   :  { %v331_v25 = vmul.f32 %v850_v19, %v323_v20  ;;  %v337_v31 = vadd.f32 -0.0041776816, %v329_v21  ;;  %v343_v37 = vmul.f32 %v828_v60, %v335_v29  ;;  %v374_v42 = vmul.f32 %v871_v57, %v810_v45 }
  0x5c   :  { %v332_v27 = vmul.f32 %v855_v23, %v324_v22  ;;  %v338_v32 = vadd.f32 -0.0041776816, %v330_v24  ;;  %v344_v38 = vmul.f32 %v834_v0, %v336_v30  ;;  %v349_v44 = vadd.f32 0.24664073, %v341_v35 }
  0x5d   :  { %v339_v33 = vadd.f32 -0.0041776816, %v331_v25  ;;  %v345_v39 = vmul.f32 %v840_v6, %v337_v31  ;;  %v350_v46 = vadd.f32 0.24664073, %v342_v36  ;;  %v351_v47 = vadd.f32 0.24664073, %v343_v37 }
  0x5e   :  { %v340_v34 = vadd.f32 -0.0041776816, %v332_v27  ;;  %v346_v40 = vmul.f32 %v846_v15, %v338_v32  ;;  %v352_v49 = vadd.f32 0.24664073, %v344_v38  ;;  %742 = vrsqrt.f32 %v812_v48 }
  0x5f   :  { %v347_v41 = vmul.f32 %v850_v19, %v339_v33  ;;  %v353_v50 = vadd.f32 0.24664073, %v345_v39  ;;  %v378_v54 = vand.u32 2147483648, %v810_v45  ;;  %v376_v61 = vsel %vm375_vm0, %v810_v45, %v374_v42 }
  0x60   :  { %v348_v43 = vmul.f32 %v855_v23, %v340_v34  ;;  %v354_v53 = vadd.f32 0.24664073, %v346_v40  ;;  %vm377_vm1 = vcmp.eq.f32.partialorder %v810_v45, 0.0  ;;  %744 = vrsqrt.f32 %v814_v51 }
  0x61   :  { %v355_v58 = vadd.f32 0.24664073, %v347_v41  ;;  %v357_v62 = vmul.f32 %v817_v52, %v349_v44  ;;  %746 = vrsqrt.f32 %v819_v55  ;;  %v358_v2 = vmul.f32 %v822_v56, %v350_v46 }
  0x62   :  { %v356_v57 = vadd.f32 0.24664073, %v348_v43  ;;  %v359_v7 = vmul.f32 %v828_v60, %v351_v47  ;;  %v360_v13 = vmul.f32 %v834_v0, %v352_v49  ;;  %748 = vrsqrt.f32 %v825_v59 }
  0x63   :  { %v361_v17 = vmul.f32 %v840_v6, %v353_v50  ;;  %v362_v18 = vmul.f32 %v846_v15, %v354_v53  ;;  %v379_v20 = vsel %vm377_vm1, %v378_v54, %v376_v61  ;;  %750 = vrsqrt.f32 %v831_v63 }
  0x64   :  { %v363_v21 = vmul.f32 %v850_v19, %v355_v58  ;;  %752 = vrsqrt.f32 %v837_v3  ;;  %v364_v52 = vmul.f32 %v855_v23, %v356_v57  ;;  %v929_v56 = vadd.f32 1.5014094, %v357_v62 }
  0x65   :  { %754 = vrsqrt.f32 %v843_v14  ;;  %v932_v60 = vadd.f32 1.5014094, %v358_v2  ;;  %v934_v0 = vadd.f32 1.5014094, %v359_v7  ;;  %v936_v6 = vadd.f32 -3.0, %v379_v20 }
  0x66   :  { %v938_v15 = vadd.f32 1.5014094, %v360_v13  ;;  %v940_v22 = vadd.f32 1.5014094, %v361_v17  ;;  %v942_v24 = vadd.f32 1.5014094, %v362_v18 }
  0x67   :  { %v944_v19 = vadd.f32 1.5014094, %v363_v21  ;;  %vm382_vm2 = vcmp.eq.f32.partialorder %v812_v48, inf  ;;  %v437_v23 = vmul.f32 -0.00020021426, %v936_v6  ;;  %vm384_vm3 = vcmp.eq.f32.partialorder %v812_v48, 0.0 }
  0x68   :  { %v756_v25 = vmov 1983009808   ;;  %v950_v27 = vadd.f32 1.5014094, %v364_v52  ;;  %v385_v28 = vand.u32 2147483648, %v812_v48  ;;  %vm389_vm4 = vcmp.eq.f32.partialorder %v814_v51, inf }
  0x69   :  { %v948_v26 = vunpack.c.l.s4 %v756_v25  ;;  %vm391_vm5 = vcmp.eq.f32.partialorder %v814_v51, 0.0  ;;  %v392_v29 = vand.u32 2147483648, %v814_v51  ;;  %vm396_vm6 = vcmp.eq.f32.partialorder %v819_v55, inf }
  0x6a   :  { %v445_v30 = vadd.f32 0.00010095056, %v437_v23  ;;  %vm398_vm7 = vcmp.eq.f32.partialorder %v819_v55, 0.0  ;;  %v399_v32 = vand.u32 2147483648, %v819_v55  ;;  %vm403_vm8 = vcmp.eq.f32.partialorder %v825_v59, inf }
  0x6b   :  { %v743_v31 = vpop.eup %742  ;;  %vm405_vm9 = vcmp.eq.f32.partialorder %v825_v59, 0.0  ;;  %v406_v34 = vand.u32 2147483648, %v825_v59  ;;  %vm410_vm10 = vcmp.eq.f32.partialorder %v831_v63, inf  ;;  %vm412_vm11 = vcmp.eq.f32.partialorder %v831_v63, 0.0 }
  0x6c   :  { %v381_v33 = vmul.f32 %v743_v31, %v812_v48  ;;  %v453_v35 = vmul.f32 %v936_v6, %v445_v30  ;;  %v413_v37 = vand.u32 2147483648, %v831_v63  ;;  %vm417_vm12 = vcmp.eq.f32.partialorder %v837_v3, inf }
  0x6d   :  { %v745_v36 = vpop.eup %744  ;;  %vm419_vm13 = vcmp.eq.f32.partialorder %v837_v3, 0.0  ;;  %v420_v41 = vand.u32 2147483648, %v837_v3  ;;  %vm424_vm14 = vcmp.eq.f32.partialorder %v843_v14, inf  ;;  %vm426_vm15 = vcmp.eq.f32.partialorder %v843_v14, 0.0 }
  0x6e   :  { %v747_v38 = vpop.eup %746  ;;  %v383_v39 = vsel %vm382_vm2, %v812_v48, %v381_v33  ;;  %v388_v40 = vmul.f32 %v745_v36, %v814_v51  ;;  %v461_v42 = vadd.f32 0.0013493432, %v453_v35  ;;  %v427_v53 = vand.u32 2147483648, %v843_v14 }
  0x6f   :  { %v749_v43 = vpop.eup %748  ;;  %v386_v44 = vsel %vm384_vm3, %v385_v28, %v383_v39  ;;  %v395_v46 = vmul.f32 %v747_v38, %v819_v55  ;;  %vm565_vm0 = vcmp.lt.f32.partialorder %v810_v45, 5.0  ;;  %vm566_vm1 = vcmp.lt.f32.partialorder %v812_v48, 5.0 }
  0x70   :  { %v751_v47 = vpop.eup %750  ;;  %v390_v49 = vsel %vm389_vm4, %v814_v51, %v388_v40  ;;  %v402_v50 = vmul.f32 %v749_v43, %v825_v59  ;;  %v985_v54 = vadd.f32 -3.0, %v386_v44  ;;  %v469_v2 = vmul.f32 %v936_v6, %v461_v42 }
  0x71   :  { %v753_v58 = vpop.eup %752  ;;  %v393_v61 = vsel %vm391_vm5, %v392_v29, %v390_v49  ;;  %v397_v57 = vsel %vm396_vm6, %v819_v55, %v395_v46  ;;  %v409_v62 = vmul.f32 %v751_v47, %v831_v63  ;;  %v627_v47 = vunpack.c.0.s8 %v948_v26 }
  0x72   :  { %v755_v7 = vpop.eup %754  ;;  %v400_v13 = vsel %vm398_vm7, %v399_v32, %v397_v57  ;;  %v404_v17 = vsel %vm403_vm8, %v825_v59, %v402_v50  ;;  %v416_v18 = vmul.f32 %v753_v58, %v837_v3  ;;  %v1000_v20 = vadd.f32 -3.0, %v393_v61 }
  0x73   :  { %v407_v21 = vsel %vm405_vm9, %v406_v34, %v404_v17  ;;  %v411_v52 = vsel %vm410_vm10, %v831_v63, %v409_v62  ;;  %v423_v23 = vmul.f32 %v755_v7, %v843_v14  ;;  %v1008_v25 = vadd.f32 -3.0, %v400_v13 }
  0x74   :  { %v414_v28 = vsel %vm412_vm11, %v413_v37, %v411_v52  ;;  %v418_v29 = vsel %vm417_vm12, %v837_v3, %v416_v18  ;;  %v1015_v30 = vadd.f32 -3.0, %v407_v21  ;;  %v438_v31 = vmul.f32 -0.00020021426, %v985_v54 }
  0x75   :  { %v421_v32 = vsel %vm419_vm13, %v420_v41, %v418_v29  ;;  %v425_v33 = vsel %vm424_vm14, %v843_v14, %v423_v23  ;;  %v1023_v34 = vadd.f32 -3.0, %v414_v28  ;;  %v439_v35 = vmul.f32 -0.00020021426, %v1000_v20 }
  0x76   :  { %v428_v36 = vsel %vm426_vm15, %v427_v53, %v425_v33  ;;  %v1028_v37 = vadd.f32 -3.0, %v421_v32  ;;  %v440_v38 = vmul.f32 -0.00020021426, %v1008_v25  ;;  %v441_v39 = vmul.f32 -0.00020021426, %v1015_v30 }
  0x77   :  { %v1032_v40 = vadd.f32 -3.0, %v428_v36  ;;  %v442_v41 = vmul.f32 -0.00020021426, %v1023_v34  ;;  %v446_v42 = vadd.f32 0.00010095056, %v438_v31  ;;  %vm567_vm2 = vcmp.lt.f32.partialorder %v814_v51, 5.0 }
  0x78   :  { %v443_v43 = vmul.f32 -0.00020021426, %v1028_v37  ;;  %v447_v44 = vadd.f32 0.00010095056, %v439_v35  ;;  %v448_v46 = vadd.f32 0.00010095056, %v440_v38 }
  0x79   :  { %v444_v49 = vmul.f32 -0.00020021426, %v1032_v40  ;;  %v449_v50 = vadd.f32 0.00010095056, %v441_v39  ;;  %v450_v53 = vadd.f32 0.00010095056, %v442_v41  ;;  %v454_v58 = vmul.f32 %v985_v54, %v446_v42 }
  0x7a   :  { %v451_v61 = vadd.f32 0.00010095056, %v443_v43  ;;  %v455_v57 = vmul.f32 %v1000_v20, %v447_v44  ;;  %v456_v62 = vmul.f32 %v1008_v25, %v448_v46  ;;  %v477_v7 = vadd.f32 -0.0036734284, %v469_v2 }
  0x7b   :  { %v452_v13 = vadd.f32 0.00010095056, %v444_v49  ;;  %v457_v17 = vmul.f32 %v1015_v30, %v449_v50  ;;  %v458_v18 = vmul.f32 %v1023_v34, %v450_v53  ;;  %v462_v21 = vadd.f32 0.0013493432, %v454_v58 }
  0x7c   :  { %v459_v52 = vmul.f32 %v1028_v37, %v451_v61  ;;  %v463_v23 = vadd.f32 0.0013493432, %v455_v57  ;;  %v464_v28 = vadd.f32 0.0013493432, %v456_v62  ;;  %v485_v29 = vmul.f32 %v936_v6, %v477_v7 }
  0x7d   :  { %v460_v31 = vmul.f32 %v1032_v40, %v452_v13  ;;  %v465_v32 = vadd.f32 0.0013493432, %v457_v17  ;;  %v466_v33 = vadd.f32 0.0013493432, %v458_v18  ;;  %v470_v35 = vmul.f32 %v985_v54, %v462_v21 }
  0x7e   :  { %v467_v36 = vadd.f32 0.0013493432, %v459_v52  ;;  %v471_v2 = vmul.f32 %v1000_v20, %v463_v23  ;;  %v472_v38 = vmul.f32 %v1008_v25, %v464_v28  ;;  %v493_v39 = vadd.f32 0.0057395077, %v485_v29 }
  0x7f   :  { %v468_v41 = vadd.f32 0.0013493432, %v460_v31  ;;  %v473_v42 = vmul.f32 %v1015_v30, %v465_v32  ;;  %v474_v43 = vmul.f32 %v1023_v34, %v466_v33  ;;  %v478_v44 = vadd.f32 -0.0036734284, %v470_v35 }
  0x80   :  { %v475_v46 = vmul.f32 %v1028_v37, %v467_v36  ;;  %v479_v49 = vadd.f32 -0.0036734284, %v471_v2  ;;  %v480_v50 = vadd.f32 -0.0036734284, %v472_v38  ;;  %v501_v53 = vmul.f32 %v936_v6, %v493_v39 }
  0x81   :  { %v476_v58 = vmul.f32 %v1032_v40, %v468_v41  ;;  %v481_v61 = vadd.f32 -0.0036734284, %v473_v42  ;;  %v482_v57 = vadd.f32 -0.0036734284, %v474_v43  ;;  %v486_v62 = vmul.f32 %v985_v54, %v478_v44 }
  0x82   :  { %v483_v7 = vadd.f32 -0.0036734284, %v475_v46  ;;  %v487_v13 = vmul.f32 %v1000_v20, %v479_v49  ;;  %v488_v17 = vmul.f32 %v1008_v25, %v480_v50  ;;  %v509_v18 = vadd.f32 -0.0076224613, %v501_v53 }
  0x83   :  { %v484_v21 = vadd.f32 -0.0036734284, %v476_v58  ;;  %v489_v52 = vmul.f32 %v1015_v30, %v481_v61  ;;  %v490_v23 = vmul.f32 %v1023_v34, %v482_v57  ;;  %v494_v28 = vadd.f32 0.0057395077, %v486_v62 }
  0x84   :  { %v491_v29 = vmul.f32 %v1028_v37, %v483_v7  ;;  %v495_v31 = vadd.f32 0.0057395077, %v487_v13  ;;  %v496_v32 = vadd.f32 0.0057395077, %v488_v17  ;;  %v517_v33 = vmul.f32 %v936_v6, %v509_v18 }
  0x85   :  { %v492_v35 = vmul.f32 %v1032_v40, %v484_v21  ;;  %v497_v36 = vadd.f32 0.0057395077, %v489_v52  ;;  %v498_v2 = vadd.f32 0.0057395077, %v490_v23  ;;  %v502_v38 = vmul.f32 %v985_v54, %v494_v28 }
  0x86   :  { %v499_v39 = vadd.f32 0.0057395077, %v491_v29  ;;  %v503_v41 = vmul.f32 %v1000_v20, %v495_v31  ;;  %v504_v42 = vmul.f32 %v1008_v25, %v496_v32  ;;  %v525_v43 = vadd.f32 0.0094388705, %v517_v33 }
  0x87   :  { %v500_v44 = vadd.f32 0.0057395077, %v492_v35  ;;  %v505_v46 = vmul.f32 %v1015_v30, %v497_v36  ;;  %v506_v49 = vmul.f32 %v1023_v34, %v498_v2  ;;  %v510_v50 = vadd.f32 -0.0076224613, %v502_v38 }
  0x88   :  { %v507_v53 = vmul.f32 %v1028_v37, %v499_v39  ;;  %v511_v58 = vadd.f32 -0.0076224613, %v503_v41  ;;  %v512_v61 = vadd.f32 -0.0076224613, %v504_v42  ;;  %v533_v57 = vmul.f32 %v936_v6, %v525_v43 }
  0x89   :  { %v508_v62 = vmul.f32 %v1032_v40, %v500_v44  ;;  %v513_v7 = vadd.f32 -0.0076224613, %v505_v46  ;;  %v514_v13 = vadd.f32 -0.0076224613, %v506_v49  ;;  %v518_v17 = vmul.f32 %v985_v54, %v510_v50 }
  0x8a   :  { %v515_v18 = vadd.f32 -0.0076224613, %v507_v53  ;;  %v519_v21 = vmul.f32 %v1000_v20, %v511_v58  ;;  %v520_v52 = vmul.f32 %v1008_v25, %v512_v61  ;;  %v541_v23 = vadd.f32 1.001674, %v533_v57 }
  0x8b   :  { %v516_v28 = vadd.f32 -0.0076224613, %v508_v62  ;;  %v521_v29 = vmul.f32 %v1015_v30, %v513_v7  ;;  %v522_v31 = vmul.f32 %v1023_v34, %v514_v13  ;;  %v526_v32 = vadd.f32 0.0094388705, %v518_v17 }
  0x8c   :  { %vm568_vm3 = vcmp.lt.f32.partialorder %v819_v55, 5.0  ;;  %v523_v33 = vmul.f32 %v1028_v37, %v515_v18  ;;  %v527_v35 = vadd.f32 0.0094388705, %v519_v21  ;;  %v528_v36 = vadd.f32 0.0094388705, %v520_v52 }
  0x8d   :  { %v549_v2 = vmul.f32 %v936_v6, %v541_v23  ;;  %vm569_vm4 = vcmp.lt.f32.partialorder %v825_v59, 5.0  ;;  %vm570_vm5 = vcmp.lt.f32.partialorder %v831_v63, 5.0  ;;  %v524_v38 = vmul.f32 %v1032_v40, %v516_v28 }
  0x8e   :  { %v529_v39 = vadd.f32 0.0094388705, %v521_v29  ;;  %v530_v41 = vadd.f32 0.0094388705, %v522_v31  ;;  %v534_v42 = vmul.f32 %v985_v54, %v526_v32  ;;  %vm571_vm6 = vcmp.lt.f32.partialorder %v837_v3, 5.0 }
  0x8f   :  { %v531_v43 = vadd.f32 0.0094388705, %v523_v33  ;;  %v535_v44 = vmul.f32 %v1000_v20, %v527_v35  ;;  %v536_v46 = vmul.f32 %v1008_v25, %v528_v36  ;;  %v557_v49 = vadd.f32 2.8329768, %v549_v2 }
  0x90   :  { %vm572_vm7 = vcmp.lt.f32.partialorder %v843_v14, 5.0  ;;  %v532_v6 = vadd.f32 0.0094388705, %v524_v38  ;;  %v537_v50 = vmul.f32 %v1015_v30, %v529_v39  ;;  %v538_v53 = vmul.f32 %v1023_v34, %v530_v41 }
  0x91   :  { %v542_v58 = vadd.f32 1.001674, %v534_v42  ;;  %v539_v61 = vmul.f32 %v1028_v37, %v531_v43  ;;  %v543_v57 = vadd.f32 1.001674, %v535_v44  ;;  %v544_v62 = vadd.f32 1.001674, %v536_v46 }
  0x92   :  { %v573_v7 = vsel %vm565_vm0, %v929_v56, %v557_v49  ;;  %v540_v13 = vmul.f32 %v1032_v40, %v532_v6  ;;  %v545_v17 = vadd.f32 1.001674, %v537_v50  ;;  %v546_v18 = vadd.f32 1.001674, %v538_v53 }
  0x93   :  { %v550_v21 = vmul.f32 %v985_v54, %v542_v58  ;;  %v547_v52 = vadd.f32 1.001674, %v539_v61  ;;  %v551_v23 = vmul.f32 %v1000_v20, %v543_v57  ;;  %v552_v28 = vmul.f32 %v1008_v25, %v544_v62  ;;  %v613_v61 = vld [vmem:[%s1148_s1] sm:$0xff] }
  0x94   :  { %v581_v29 = vmul.f32 %v778_v4, %v573_v7  ;;  %v548_v31 = vadd.f32 1.001674, %v540_v13  ;;  %v553_v32 = vmul.f32 %v1015_v30, %v545_v17  ;;  %v554_v33 = vmul.f32 %v1023_v34, %v546_v18 }
  0x95   :  { %v558_v45 = vadd.f32 2.8329768, %v550_v21  ;;  %v555_v56 = vmul.f32 %v1028_v37, %v547_v52  ;;  %v559_v35 = vadd.f32 2.8329768, %v551_v23  ;;  %v560_v36 = vadd.f32 2.8329768, %v552_v28 }
  0x96   :  { %v589_v2 = vmul.f32 1.4142135, %v581_v29  ;;  %v556_v54 = vmul.f32 %v1032_v40, %v548_v31  ;;  %v561_v38 = vadd.f32 2.8329768, %v553_v32  ;;  %v562_v39 = vadd.f32 2.8329768, %v554_v33 }
  0x97   :  { %v574_v20 = vsel %vm566_vm1, %v932_v60, %v558_v45  ;;  %v563_v4 = vadd.f32 2.8329768, %v555_v56  ;;  %v575_v25 = vsel %vm567_vm2, %v934_v0, %v559_v35  ;;  %v576_v30 = vsel %vm568_vm3, %v938_v15, %v560_v36 }
  0x98   :  { %v582_v34 = vmul.f32 %v780_v5, %v574_v20  ;;  %v564_v37 = vadd.f32 2.8329768, %v556_v54  ;;  %v577_v40 = vsel %vm569_vm4, %v940_v22, %v561_v38  ;;  %v578_v48 = vsel %vm570_vm5, %v942_v24, %v562_v39 }
  0x99   :  { %v583_v60 = vmul.f32 %v782_v8, %v575_v25  ;;  %v579_v51 = vsel %vm571_vm6, %v944_v19, %v563_v4  ;;  %v584_v55 = vmul.f32 %v784_v9, %v576_v30  ;;  %v585_v0 = vmul.f32 %v786_v10, %v577_v40 }
  0x9a   :  { %v586_v5 = vmul.f32 %v788_v11, %v578_v48  ;;  %v580_v59 = vsel %vm572_vm7, %v950_v27, %v564_v37  ;;  %v587_v15 = vmul.f32 %v790_v12, %v579_v51  ;;  %v590_v63 = vmul.f32 1.4142135, %v582_v34 }
  0x9b   :  { %v591_v22 = vmul.f32 1.4142135, %v583_v60  ;;  %v588_v8 = vmul.f32 %v795_v16, %v580_v59  ;;  %v592_v24 = vmul.f32 1.4142135, %v584_v55  ;;  %v593_v41 = vmul.f32 1.4142135, %v585_v0 }
  0x9c   :  { %v594_v3 = vmul.f32 1.4142135, %v586_v5  ;;  %v595_v19 = vmul.f32 1.4142135, %v587_v15  ;;  %v597_v42 = vmul.f32 0.1, %v589_v2  ;;  %v630_v10 = vsub.s32 %v627_v47, %v772_v1 }
  0x9d   :  { %v598_v9 = vmul.f32 0.1, %v590_v63  ;;  %v596_v11 = vmul.f32 1.4142135, %v588_v8  ;;  %v599_v43 = vmul.f32 0.1, %v591_v22 }
  0x9e   :  { %v600_v14 = vmul.f32 0.1, %v592_v24  ;;  %v601_v27 = vmul.f32 0.1, %v593_v41  ;;  %v602_v44 = vmul.f32 0.1, %v594_v3 }
  0x9f   :  { %v603_v12 = vmul.f32 0.1, %v595_v19  ;;  %v623_v46 = vcombine.low %v597_v42, %v598_v9  ;;  %v604_v49 = vmul.f32 0.1, %v596_v11  ;;  %v614_v47 = vld [vmem:[%s1148_s1 + $0x8] sm:$0xff] }
  0xa0   :  { %v624_v6 = vcombine.low %v599_v43, %v600_v14  ;;  %v640_v50 = vcombine.low %v601_v27, %v602_v44 }
  0xa1   :  { %v631_v16 = vrot.slane %v623_v46, %v630_v10  ;;  %v641_v58 = vcombine.low %v603_v12, %v604_v49 }
  0xa2   :  { %v638_v53 = vrot.slane %v624_v6, %v630_v10  ;;  %v648_v57 = vrot.slane %v640_v50, %v630_v10 }
  0xa3   :  { %v655_v1 = vrot.slane %v641_v58, %v630_v10 }
  0xa4   :  { %v639_v26 = vcombine.low %v631_v16, %v638_v53 }
  0xa5   :  { %v656_v62 = vcombine.low %v648_v57, %v655_v1 }
  0xa6   :  { %v659_v7 = vadd.f32 %v639_v26, %v613_v61 }
  0xa7   :  { %v660_v13 = vadd.f32 %v656_v62, %v614_v47 }
  0xa8   :  { %661 = vst [vmem:[%s1149_s2] sm:$0xff] %v659_v7 }
  0xa9   :  { %662 = vst [vmem:[%s1149_s2 + $0x8] sm:$0xff] %v660_v13 }

</bundles_post_ra>
